<compile_context>
chip_gen: v6e
topology: v6e:2x2x1
jax: 0.10.0
libtpu: 0.0.40
codegen_flags: <defaults>
</compile_context>

<pallas_src>
import functools

import jax
import jax.numpy as jnp
from jax.experimental import pallas as pl
from jax.experimental.pallas import tpu as pltpu


def _round_up(x: int, m: int) -> int:
    return ((x + m - 1) // m) * m


def _vmem_cap_bytes() -> int:
    """Physical VMEM capacity; conservative 64 MiB fallback (v7x per-TC)."""
    try:
        return int(pltpu.get_tpu_info().vmem_capacity_bytes)
    except Exception:  # query unavailable -> assume the smallest generation
        return 64 << 20


def _mm_cat_kernel(x1_ref, x2_ref, out_ref, acc_ref):
    """Grid (cdiv(M,tm), cdiv(N,tn), Kp//tk); acc_ref is f32 (tm, tn) VMEM."""
    k = pl.program_id(2)

    @pl.when(k == 0)
    def _init():
        acc_ref[...] = jnp.zeros_like(acc_ref)

    acc_ref[...] += jnp.dot(
        x1_ref[...], x2_ref[...], preferred_element_type=jnp.float32
    )

    @pl.when(k == pl.num_programs(2) - 1)
    def _finalize():
        tile = acc_ref[...].astype(out_ref.dtype)
        # Fused cat([v1, v1, v1], 0): replicate the finished tile into the
        # three slabs of the (3, M, N) result (three cheap VMEM stores).
        out_ref[0, :, :] = tile
        out_ref[1, :, :] = tile
        out_ref[2, :, :] = tile


@functools.partial(jax.jit, static_argnames=("tm", "tn", "tk", "input_dtype"))
def mm_cat(x1, x2, *, tm=512, tn=512, tk=512, input_dtype=None):
    M, K = x1.shape
    K2, N = x2.shape
    assert K == K2, "inner dimensions must match"
    out_dtype = jnp.result_type(x1.dtype, x2.dtype)

    # Optional reduced-precision input path (big MXU/HBM lever on v6e/v7x);
    # accumulation stays f32 regardless.
    if input_dtype is not None:
        x1 = x1.astype(input_dtype)
        x2 = x2.astype(input_dtype)
    in_itemsize = jnp.dtype(x1.dtype).itemsize
    out_itemsize = jnp.dtype(out_dtype).itemsize
    sublane = max(8, 32 // in_itemsize)  # 8 for f32, 16 for bf16

    # Shrink tiles for small problems while keeping TPU alignment.
    tm = min(tm, _round_up(M, sublane))
    tn = min(tn, _round_up(N, 128))
    tk = min(tk, _round_up(K, 128))

    # v7x has 2 TensorCores: if the (i, j) grid is a single tile, split M so
    # the "parallel" axes can be sharded across both cores.
    if pl.cdiv(M, tm) * pl.cdiv(N, tn) == 1 and M > sublane:
        tm = _round_up(max(pl.cdiv(tm, 2), sublane), sublane)

    # Zero-pad K only.  Boundary blocks along M/N are handled (masked) by
    # Pallas and their garbage never reaches valid output; padded K would
    # contaminate the accumulation, so it must be zeros.
    Kp = _round_up(K, tk)
    if Kp != K:
        x1 = jnp.pad(x1, ((0, 0), (0, Kp - K)))
        x2 = jnp.pad(x2, ((0, Kp - K), (0, 0)))

    grid = (pl.cdiv(M, tm), pl.cdiv(N, tn), Kp // tk)

    cost = pl.CostEstimate(
        flops=2 * M * N * K,
        transcendentals=0,
        # x1 is re-streamed once per N-tile, x2 once per M-tile.
        bytes_accessed=(
            M * Kp * in_itemsize * grid[1]
            + Kp * N * in_itemsize * grid[0]
            + 3 * M * N * out_itemsize
        ),
    )

    # Double-buffered input tiles + double-buffered (3, tm, tn) output tile
    # + f32 accumulator, plus headroom; never above 75% of physical VMEM.
    tile_bytes = (
        2 * (tm * tk + tk * tn) * in_itemsize
        + 2 * 3 * tm * tn * out_itemsize
        + tm * tn * 4
    )
    vmem_limit = min(
        max(tile_bytes + (8 << 20), 16 << 20),
        int(0.75 * _vmem_cap_bytes()),
    )

    out = pl.pallas_call(
        _mm_cat_kernel,
        out_shape=jax.ShapeDtypeStruct((3, M, N), out_dtype),
        grid_spec=pltpu.PrefetchScalarGridSpec(
            num_scalar_prefetch=0,
            grid=grid,
            in_specs=[
                pl.BlockSpec((tm, tk), lambda i, j, k: (i, k)),
                pl.BlockSpec((tk, tn), lambda i, j, k: (k, j)),
            ],
            out_specs=pl.BlockSpec((3, tm, tn), lambda i, j, k: (0, i, j)),
            scratch_shapes=[pltpu.VMEM((tm, tn), jnp.float32)],
        ),
        compiler_params=pltpu.CompilerParams(
            dimension_semantics=("parallel", "parallel", "arbitrary"),
            vmem_limit_bytes=vmem_limit,
        ),
        cost_estimate=cost,
    )(x1, x2)

    # (3, M, N) is exactly the cat layout -> contiguous reshape, no copy.
    return out.reshape(3 * M, N)


if __name__ == "__main__":
    key = jax.random.PRNGKey(0)
    k1, k2, k3, k4 = jax.random.split(key, 4)

    # Small shapes consistent with the module's mm (the original (3,4)x(2,5)
    # example is shape-incompatible for torch.mm, so pick compatible ones).
    M, K, N = 12, 40, 20
    x1 = jax.random.normal(k1, (M, K), dtype=jnp.float32)
    x2 = jax.random.normal(k2, (K, N), dtype=jnp.float32)

    out = mm_cat(x1, x2)
    jax.block_until_ready(out)

    v1 = jnp.dot(x1, x2, precision=jax.lax.Precision.HIGHEST)
    ref = jnp.concatenate([v1, v1, v1], axis=0)
    assert out.shape == (3 * M, N)
    assert jnp.allclose(out, ref, atol=1e-3, rtol=1e-3), float(
        jnp.max(jnp.abs(out - ref))
    )

    # Larger check exercising the tiled, multi-k accumulating path and the
    # 2-way M split for the parallel grid axes.
    Mb, Kb, Nb = 384, 1024, 512
    a = jax.random.normal(k3, (Mb, Kb), dtype=jnp.float32)
    b = jax.random.normal(k4, (Kb, Nb), dtype=jnp.float32)
    out2 = mm_cat(a, b)
    jax.block_until_ready(out2)

    v1b = jnp.dot(a, b, precision=jax.lax.Precision.HIGHEST)
    ref2 = jnp.concatenate([v1b, v1b, v1b], axis=0)
    assert out2.shape == (3 * Mb, Nb)
    assert jnp.allclose(out2, ref2, atol=2e-2, rtol=2e-3), float(
        jnp.max(jnp.abs(out2 - ref2))
    )

    print("KERNEL_OK")
</pallas_src>

<mosaic_0001>
module attributes {stable_mosaic.version = 11 : i64} {
  func.func @_mm_cat_kernel(%arg0: i32, %arg1: i32, %arg2: i32, %arg3: memref<8x128xf32, #tpu.memory_space<vmem>>, %arg4: memref<128x128xf32, #tpu.memory_space<vmem>>, %arg5: memref<3x8x128xf32, #tpu.memory_space<vmem>>, %arg6: memref<8x128xf32, #tpu.memory_space<vmem>>) attributes {dimension_semantics = [#tpu.dimension_semantics<parallel>, #tpu.dimension_semantics<parallel>, #tpu.dimension_semantics<arbitrary>], iteration_bounds = array<i64: 2, 1, 1>, scalar_prefetch = 0 : i64, scratch_operands = 1 : i64, tpu.core_type = #tpu.core_type<tc>, window_params = [{transform_indices = @transform_0, window_bounds = array<i64: 8, 128>}, {transform_indices = @transform_1, window_bounds = array<i64: 128, 128>}, {transform_indices = @transform_2, window_bounds = array<i64: 3, 8, 128>}]} {
    %c0_i32 = arith.constant 0 : i32
    %0 = arith.cmpi eq, %arg2, %c0_i32 : i32
    %1 = arith.extui %0 : i1 to i32
    %c0_i32_0 = arith.constant 0 : i32
    %2 = arith.cmpi ne, %1, %c0_i32_0 : i32
    scf.if %2 {
      %cst_10 = arith.constant 0.000000e+00 : f32
      %12 = vector.broadcast %cst_10 : f32 to vector<8x128xf32>
      %c0_11 = arith.constant 0 : index
      %c0_12 = arith.constant 0 : index
      %13 = vector.load %arg6[%c0_11, %c0_12] : memref<8x128xf32, #tpu.memory_space<vmem>>, vector<8x128xf32>
      tpu.vector_store %arg6[%c0_11, %c0_12], %12 {strides = array<i32>} : memref<8x128xf32, #tpu.memory_space<vmem>>, vector<8x128xf32>,
    } else {
    }
    %c0 = arith.constant 0 : index
    %c0_1 = arith.constant 0 : index
    %3 = vector.load %arg6[%c0, %c0_1] : memref<8x128xf32, #tpu.memory_space<vmem>>, vector<8x128xf32>
    %c0_2 = arith.constant 0 : index
    %c0_3 = arith.constant 0 : index
    %4 = vector.load %arg3[%c0_2, %c0_3] : memref<8x128xf32, #tpu.memory_space<vmem>>, vector<8x128xf32>
    %c0_4 = arith.constant 0 : index
    %c0_5 = arith.constant 0 : index
    %5 = vector.load %arg4[%c0_4, %c0_5] : memref<128x128xf32, #tpu.memory_space<vmem>>, vector<128x128xf32>
    %cst = arith.constant dense<0.000000e+00> : vector<8x128xf32>
    %6 = tpu.matmul %4, %5, %cst {dimension_numbers = #tpu.dot_dimension_numbers<[1], [0], [0], [1], [0, 0, 1, 1], [], []>} : vector<8x128xf32>, vector<128x128xf32>, vector<8x128xf32> -> vector<8x128xf32>
    %7 = arith.addf %3, %6 : vector<8x128xf32>
    %c0_6 = arith.constant 0 : index
    %c0_7 = arith.constant 0 : index
    %8 = vector.load %arg6[%c0_6, %c0_7] : memref<8x128xf32, #tpu.memory_space<vmem>>, vector<8x128xf32>
    tpu.vector_store %arg6[%c0_6, %c0_7], %7 {strides = array<i32>} : memref<8x128xf32, #tpu.memory_space<vmem>>, vector<8x128xf32>,
    %c0_i32_8 = arith.constant 0 : i32
    %9 = arith.cmpi eq, %arg2, %c0_i32_8 : i32
    %10 = arith.extui %9 : i1 to i32
    %c0_i32_9 = arith.constant 0 : i32
    %11 = arith.cmpi ne, %10, %c0_i32_9 : i32
    scf.if %11 {
      %c0_10 = arith.constant 0 : index
      %c0_11 = arith.constant 0 : index
      %12 = vector.load %arg6[%c0_10, %c0_11] : memref<8x128xf32, #tpu.memory_space<vmem>>, vector<8x128xf32>
      %c0_12 = arith.constant 0 : index
      %c0_13 = arith.constant 0 : index
      %c0_14 = arith.constant 0 : index
      %13 = vector.load %arg5[%c0_12, %c0_13, %c0_14] : memref<3x8x128xf32, #tpu.memory_space<vmem>>, vector<1x8x128xf32>
      %14 = vector.shape_cast %13 : vector<1x8x128xf32> to vector<8x128xf32>
      %15 = vector.shape_cast %12 : vector<8x128xf32> to vector<1x8x128xf32>
      tpu.vector_store %arg5[%c0_12, %c0_13, %c0_14], %15 {strides = array<i32>} : memref<3x8x128xf32, #tpu.memory_space<vmem>>, vector<1x8x128xf32>,
      %c1 = arith.constant 1 : index
      %c0_15 = arith.constant 0 : index
      %c0_16 = arith.constant 0 : index
      %16 = vector.load %arg5[%c1, %c0_15, %c0_16] : memref<3x8x128xf32, #tpu.memory_space<vmem>>, vector<1x8x128xf32>
      %17 = vector.shape_cast %16 : vector<1x8x128xf32> to vector<8x128xf32>
      %18 = vector.shape_cast %12 : vector<8x128xf32> to vector<1x8x128xf32>
      tpu.vector_store %arg5[%c1, %c0_15, %c0_16], %18 {strides = array<i32>} : memref<3x8x128xf32, #tpu.memory_space<vmem>>, vector<1x8x128xf32>,
      %c2 = arith.constant 2 : index
      %c0_17 = arith.constant 0 : index
      %c0_18 = arith.constant 0 : index
      %19 = vector.load %arg5[%c2, %c0_17, %c0_18] : memref<3x8x128xf32, #tpu.memory_space<vmem>>, vector<1x8x128xf32>
      %20 = vector.shape_cast %19 : vector<1x8x128xf32> to vector<8x128xf32>
      %21 = vector.shape_cast %12 : vector<8x128xf32> to vector<1x8x128xf32>
      tpu.vector_store %arg5[%c2, %c0_17, %c0_18], %21 {strides = array<i32>} : memref<3x8x128xf32, #tpu.memory_space<vmem>>, vector<1x8x128xf32>,
    } else {
    }
    return
  }
  func.func @transform_0(%arg0: i32, %arg1: i32, %arg2: i32) -> (i32, i32) {
    %c0_i32 = arith.constant 0 : i32
    return %arg0, %arg2 : i32, i32
  }
  func.func @transform_1(%arg0: i32, %arg1: i32, %arg2: i32) -> (i32, i32) {
    %c0_i32 = arith.constant 0 : i32
    return %arg2, %arg1 : i32, i32
  }
  func.func @transform_2(%arg0: i32, %arg1: i32, %arg2: i32) -> (i32, i32, i32) {
    %c0_i32 = arith.constant 0 : i32
    %c0_i32_0 = arith.constant 0 : i32
    return %c0_i32, %arg0, %arg1 : i32, i32, i32
  }
}

</mosaic_0001>

<bundles_post_ra>
// kernel: mm_cat.1
= control target key start
LH: loop header
LB: loop body
LE: loop exit
PB: predicated region body
PF: predicated region fallthrough
CT: control target
= control target key end

     0   :  { %s603_s9 = smov 0   ;;  %s605_s10 = smov 0   ;;  %s721_s0 = inlined_call_operand.vmem [shape: f32[12,128], index: 0, kind: input, shape index: {}]   ;;  %s722_s1 = inlined_call_operand.vmem [shape: f32[128,20], index: 1, kind: input, shape index: {}]   ;;  %s723_s2 = inlined_call_operand.vmem [shape: f32[3,12,20], index: 2, kind: output, shape index: {}]  }
   0x1   :  { %s607_s11 = smov 0   ;;  %s609_s12 = smov 0  }
   0x2   :  { %s611_s13 = smov 0  }
   0x3 LB: > { %s439_s14 = sadd.s32 4294967295, %s584_s13   ;;  %s31_s15 = sadd.s32 1, %s580_s12  ;;  %s584_s13 = sphi %s611_s13, %s12_s13   ;;  %s580_s12 = sphi %s609_s12, %s728_s12   ;;  %s576_s11 = sphi %s607_s11, %s727_s11   ;;  %s572_s10 = sphi %s605_s10, %s726_s10   ;;  %s568_s9 = sphi %s603_s9, %s725_s9  }
   0x4   : > { %p33_p0 = scmp.ge.s32.totalorder %s31_s15, 2  ;;  %s96_s16 = sadd.s32 1, %s572_s10 }
   0x5   : > { %p106_p1 = scmp.ne.s32.totalorder %s572_s10, %s568_s9  ;;  %p107_p2 = scmp.eq.s32.totalorder %s439_s14, 1 }
   0x6   : > { %s730_s15 = smov (%p33_p0, %s31_s15), 0  ;;  %p444_p4 = scmp.ge.s32.totalorder %s584_s13, 1 }
   0x7   : > { %p635_p3 = por %p107_p2, %p106_p1  ;;  %s91_s18 = ssub.s32 %s580_s12, %s730_s15 }
   0x8   : > { %p153_p5 = scmp.lt.s32.totalorder %s584_s13, 3  ;;  %p94_p6 = scmp.eq.s32.totalorder %s91_s18, 0 }
   0xa   : > { %p154_p7 = pnand %p444_p4, %p153_p5 }
   0xb   : > { %s644_s19 = scalar_select %p94_p6, %s572_s10, %s96_s16  }
   0xc   : > { %157 = sbr.rel (%p154_p7) target bundleno = 253 (0xfd), region = 28  ;;  %p184_p8 = scmp.lt.s32.totalorder (!%p154_p7), %s576_s11, 1 }
   0xd   : > { %s181_s14 = sand.u32 (!%p154_p7), 1, %s568_s9  }
   0xe   : > { %s503_s16 = smul.u32 (!%p154_p7), 24, %s181_s14 }
  0x10   : > { %s183_s18 = scalar_lea.vmem (!%p154_p7), [#allocation3], %s503_s16 }
  0x11   : > { %v222_v0 = vld [vmem:[%s722_s1 + $0x78] sm:$0xff]  ;;  %v586_v1 = vmov 0.0   ;;  %v221_v2 = vld [vmem:[%s722_s1 + $0x70] sm:$0xff]  ;;  %vm587_vm0 = vmmov 0   ;;  %v220_v3 = vld [vmem:[%s722_s1 + $0x68] sm:$0xff]  ;;  %s185_s22 = scalar_select %p184_p8, %s576_s11, 1 }
  0x12   : > { %468 = vmatprep.subr.mxu0 %v586_v1  ;;  %500 = vmatprep.mubr.msk.f32.mxu0 %vm587_vm0, %v586_v1  ;;  %v219_v4 = vld [vmem:[%s722_s1 + $0x60] sm:$0xff]  ;;  %v218_v5 = vld [vmem:[%s722_s1 + $0x58] sm:$0xff]  ;;  %v217_v6 = vld [vmem:[%s722_s1 + $0x50] sm:$0xff]  ;;  %s448_s20 = sshll.u32 (%p635_p3), %s576_s11, 3 }
  0x13   : > { %469 = vmatpush3.msra.mxu0 %v222_v0  ;;  %v216_v7 = vld [vmem:[%s722_s1 + $0x48] sm:$0xff]  ;;  %v215_v8 = vld [vmem:[%s722_s1 + $0x40] sm:$0xff]  ;;  %v214_v9 = vld [vmem:[%s722_s1 + $0x38] sm:$0xff]  ;;  %s445_s27 = sshll.u32 %s185_s22, 3  ;;  %s313_s23 = scalar_lea.vmem (%p635_p3), %s723_s2, %s448_s20 }
  0x14   : > { %470 = vmatprep.subr.mxu0 %v586_v1  ;;  %v213_v10 = vld [vmem:[%s722_s1 + $0x30] sm:$0xff]  ;;  %v212_v11 = vld [vmem:[%s722_s1 + $0x28] sm:$0xff]  ;;  %v211_v12 = vld [vmem:[%s722_s1 + $0x20] sm:$0xff]  ;;  %s190_s6 = scalar_lea.vmem %s721_s0, %s445_s27 }
  0x15   : > { %471 = vmatpush3.msra.mxu0 %v221_v2  ;;  %v210_v13 = vld [vmem:[%s722_s1 + $0x18] sm:$0xff]  ;;  %v209_v14 = vld [vmem:[%s722_s1 + $0x10] sm:$0xff]  ;;  %v208_v15 = vld [vmem:[%s722_s1 + $0x8] sm:$0xff] }
  0x16   : > { %472 = vmatprep.subr.mxu0 %v586_v1  ;;  %v207_v16 = vld [vmem:[%s722_s1] sm:$0xff] }
  0x17   : > { %473 = vmatpush3.msra.mxu0 %v220_v3  ;;  %v206_v17 = vld [vmem:[%s190_s6] sm:$0xff] }
  0x18   : > { %474 = vmatprep.subr.mxu0 %v586_v1 }
  0x19   : > { %475 = vmatpush3.msra.mxu0 %v219_v4 }
  0x1a   : > { %476 = vmatprep.subr.mxu0 %v586_v1 }
  0x1b   : > { %477 = vmatpush3.msra.mxu0 %v218_v5 }
  0x1c   : > { %478 = vmatprep.subr.mxu0 %v586_v1 }
  0x1d   : > { %479 = vmatpush3.msra.mxu0 %v217_v6 }
  0x1e   : > { %480 = vmatprep.subr.mxu0 %v586_v1 }
  0x1f   : > { %481 = vmatpush3.msra.mxu0 %v216_v7 }
  0x20   : > { %482 = vmatprep.subr.mxu0 %v586_v1 }
  0x21   : > { %483 = vmatpush3.msra.mxu0 %v215_v8 }
  0x22   : > { %484 = vmatprep.subr.mxu0 %v586_v1 }
  0x23   : > { %485 = vmatpush3.msra.mxu0 %v214_v9 }
  0x24   : > { %486 = vmatprep.subr.mxu0 %v586_v1 }
  0x25   : > { %487 = vmatpush3.msra.mxu0 %v213_v10 }
  0x26   : > { %488 = vmatprep.subr.mxu0 %v586_v1 }
  0x27   : > { %489 = vmatpush3.msra.mxu0 %v212_v11 }
  0x28   : > { %490 = vmatprep.subr.mxu0 %v586_v1 }
  0x29   : > { %491 = vmatpush3.msra.mxu0 %v211_v12 }
  0x2a   : > { %492 = vmatprep.subr.mxu0 %v586_v1 }
  0x2b   : > { %493 = vmatpush3.msra.mxu0 %v210_v13 }
  0x2c   : > { %494 = vmatprep.subr.mxu0 %v586_v1 }
  0x2d   : > { %495 = vmatpush3.msra.mxu0 %v209_v14 }
  0x2e   : > { %496 = vmatprep.subr.mxu0 %v586_v1 }
  0x2f   : > { %497 = vmatpush3.msra.mxu0 %v208_v15 }
  0x30   : > { %498 = vmatprep.subr.mxu0 %v586_v1 }
  0x31   : > { %499 = vmatpush3.msra.mxu0 %v207_v16 }
  0x32   : > { %501 = vmatmul.mubr.f32.vlgmr.msra.gmra.mxu0 %v206_v17 }
  0xf0   : > { %310 = sbr.rel (!%p635_p3) target bundleno = 253 (0xfd), region = 40 }
  0xf2   : > { %v289_v18 = vpop.f32.mrf.mxu0 }
  0xf3   : > { %299 = vst [vmem:[%s183_s18] sm:$0xff] %v289_v18  ;;  %446 = vst [vmem:[%s183_s18 + $0x8] sm:$0xff] %v289_v18 }
  0xf4   : > { %447 = vst [vmem:[%s183_s18 + $0x10] sm:$0xff] %v289_v18  ;;  %v502_v19 = vpop.f32.mrf.mxu0 }
  0xfa   : > { %v346_v20 = vld [vmem:[%s183_s18] sm:$0xff]  ;;  %v348_v21 = vld [vmem:[%s183_s18 + $0x8] sm:$0xff] }
  0xfb   : > { %v350_v22 = vld [vmem:[%s183_s18 + $0x10] sm:$0xff]  ;;  %347 = vst [vmem:[%s313_s23] sm:$0xff] %v346_v20  ;;  %349 = vst [vmem:[%s313_s23 + $0x10] sm:$0xff] %v348_v21 }
  0xfc   : > { %351 = vst [vmem:[%s313_s23 + $0x20] sm:$0xff] %v350_v22 }
  0xfd PF: > { %s12_s13 = sadd.s32 1, %s584_s13   ;;  %s725_s9 = smov %s572_s10 }
  0xfe   : > { %p9_p9 = scmp.ge.s32.totalorder %s12_s13, 4   ;;  %s726_s10 = smov %s644_s19 }
  0xff   : > { %s727_s11 = smov %s580_s12  ;;  %s728_s12 = smov %s730_s15 }
 0x100   :  { %11 = sbr.rel (!%p9_p9) target bundleno = 3 (0x3), region = 109 }

</bundles_post_ra>
